<compile_context>
chip_gen: v7x
topology: tpu7x:2x2x1
jax: 0.10.0
libtpu: 0.0.40
codegen_flags: <defaults>
</compile_context>

<pallas_src>
import functools
import math

import jax
import jax.numpy as jnp
from jax import lax
from jax.experimental import pallas as pl
from jax.experimental.pallas import tpu as pltpu


def _group_scaling_kernel(x_ref, o_ref, *, group_num: int, cg: int, eps: float):
    x = x_ref[...]                                   # (tile_rows, C), lane-dense
    tr, C = x.shape
    G = group_num

    xf = x.astype(jnp.float32)
    x2 = xf * xf                                     # f32 squares (VPU)

    # Constant one-hot group matrices, built without integer division:
    #   down[c, g] = 1 if channel c belongs to group g      (C, G)
    #   up[g, c]   = 1 if channel c belongs to group g      (G, C)
    ch = lax.broadcasted_iota(jnp.int32, (C, G), 0)
    gr = lax.broadcasted_iota(jnp.int32, (C, G), 1)
    down = ((ch >= gr * cg) & (ch < (gr + 1) * cg)).astype(jnp.float32)
    gr2 = lax.broadcasted_iota(jnp.int32, (G, C), 0)
    ch2 = lax.broadcasted_iota(jnp.int32, (G, C), 1)
    up = ((ch2 >= gr2 * cg) & (ch2 < (gr2 + 1) * cg)).astype(jnp.float32)

    # Per-group sum of squares (skinny MXU matmul; rows stay independent).
    ssq = jnp.dot(x2, down, preferred_element_type=jnp.float32)        # (tr, G)
    inv = lax.rsqrt(ssq * (1.0 / cg) + eps)                            # EUP rsqrt
    # Broadcast the per-group inverse scale back to all C channels (MXU again;
    # avoids jnp.repeat / lane relayouts).
    inv_full = jnp.dot(inv, up, preferred_element_type=jnp.float32)    # (tr, C)

    # Final multiply in the input dtype (f32 stays f32; bf16 multiplies in bf16).
    o_ref[...] = (x * inv_full.astype(x.dtype)).astype(o_ref.dtype)


def group_scaling_1d(x: jax.Array, *, eps: float = 1e-5, group_num: int = 4) -> jax.Array:
    """Pallas implementation of GroupScaling1D.forward for input of shape (T, B, C)."""
    T, B, C = x.shape
    assert C % group_num == 0, "C must be divisible by group_num"
    cg = C // group_num
    R = T * B

    # ---- Lane-density fix for small C: fold rows into lanes ------------------
    # View (R, C) as (R/k, k*C) with k*C a multiple of 128; the group pattern
    # simply repeats k times per super-row, so group_num' = k * group_num.
    fold = 1
    if C % 128 != 0:
        k0 = 128 // math.gcd(C, 128)
        k = k0
        while k <= R and R % k != 0:
            k += k0
        if k <= R and R % k == 0:
            fold = k
    R2 = R // fold
    C2 = C * fold
    G2 = group_num * fold

    x2d = x.reshape(R2, C2)   # row-major view; cheap wrapper-side glue

    # ---- Tile sizing ---------------------------------------------------------
    dtype_bytes = jnp.dtype(x.dtype).itemsize
    row_align = {4: 8, 2: 16, 1: 32}.get(dtype_bytes, 8)

    # Budget on the f32-expanded tile footprint (kernel temporaries are f32-sized
    # regardless of input dtype). ~4 MiB per f32 tile keeps total VMEM use
    # (2x in + 2x out double buffers + ~3 f32 temporaries) well under 48 MiB.
    budget_bytes = 4 * 1024 * 1024
    rows_fit = max(row_align, budget_bytes // max(1, C2 * 4))
    tile_rows = min(R2, rows_fit)
    if tile_rows < R2:
        tile_rows = max(row_align, (tile_rows // row_align) * row_align)
        # Prefer a tile that divides R2 exactly (no padding, no ragged edge).
        t = tile_rows
        while t >= row_align:
            if R2 % t == 0:
                tile_rows = t
                break
            t -= row_align
        # If no aligned divisor exists, keep tile_rows; Pallas drops OOB writes
        # of the ragged last block and garbage stays confined to discarded rows.
    num_tiles = pl.cdiv(R2, tile_rows)

    kernel = functools.partial(_group_scaling_kernel, group_num=G2, cg=cg, eps=eps)

    out2d = pl.pallas_call(
        kernel,
        out_shape=jax.ShapeDtypeStruct((R2, C2), x.dtype),
        grid_spec=pltpu.PrefetchScalarGridSpec(
            num_scalar_prefetch=0,
            grid=(num_tiles,),
            in_specs=[pl.BlockSpec((tile_rows, C2), lambda i: (i, 0))],
            out_specs=pl.BlockSpec((tile_rows, C2), lambda i: (i, 0)),
        ),
        compiler_params=pltpu.CompilerParams(
            dimension_semantics=("parallel",),
            vmem_limit_bytes=48 * 1024 * 1024,
        ),
    )(x2d)

    return out2d.reshape(T, B, C)


def _reference(x, eps=1e-5, group_num=4):
    T, B, C = x.shape
    cg = C // group_num
    xf = x.astype(jnp.float32)
    g = xf.reshape(T, B, group_num, cg)
    m2 = jnp.mean(g * g, axis=3, keepdims=True)
    m2 = jnp.broadcast_to(m2, (T, B, group_num, cg)).reshape(T, B, C)
    return (xf / jnp.sqrt(m2 + eps)).astype(x.dtype)


if __name__ == "__main__":
    # GroupScaling1D has no learnable parameters; only eps and group_num.
    key = jax.random.PRNGKey(0)
    k1, k2 = jax.random.split(key)

    # Primary test: seq=8, batch=2, hidden=32, group_num=4 -> Cg=8.
    # (C=32 exercises the row->lane folding path: (16, 32) -> (4, 128).)
    T, B, C = 8, 2, 32
    x = jax.random.normal(k1, (T, B, C), dtype=jnp.float32)
    out = jax.block_until_ready(group_scaling_1d(x, eps=1e-5, group_num=4))
    ref = _reference(x, eps=1e-5, group_num=4)
    assert out.shape == (T, B, C)
    assert jnp.allclose(out, ref, atol=1e-5, rtol=1e-5), "mismatch vs reference (folded path)"

    # Secondary test: C=64 with R=21 (no valid fold) -> unfolded small-C path.
    T2, B2, C2 = 7, 3, 64
    x2 = jax.random.normal(k2, (T2, B2, C2), dtype=jnp.float32)
    out2 = jax.block_until_ready(group_scaling_1d(x2, eps=1e-5, group_num=4))
    ref2 = _reference(x2, eps=1e-5, group_num=4)
    assert jnp.allclose(out2, ref2, atol=1e-5, rtol=1e-5), "mismatch vs reference (unfolded path)"

    print("KERNEL_OK")
</pallas_src>

<mosaic_0001>
module attributes {stable_mosaic.version = 11 : i64} {
  func.func @_group_scaling_kernel(%arg0: i32, %arg1: memref<4x128xf32, #tpu.memory_space<vmem>>, %arg2: memref<4x128xf32, #tpu.memory_space<vmem>>) attributes {dimension_semantics = [#tpu.dimension_semantics<parallel>], iteration_bounds = array<i64: 1>, scalar_prefetch = 0 : i64, scratch_operands = 0 : i64, tpu.core_type = #tpu.core_type<tc>, window_params = [{transform_indices = @transform_0, window_bounds = array<i64: 4, 128>}, {transform_indices = @transform_1, window_bounds = array<i64: 4, 128>}]} {
    %c0 = arith.constant 0 : index
    %c0_0 = arith.constant 0 : index
    %0 = vector.load %arg1[%c0, %c0_0] : memref<4x128xf32, #tpu.memory_space<vmem>>, vector<4x128xf32>
    %1 = arith.mulf %0, %0 : vector<4x128xf32>
    %2 = tpu.iota {dimensions = array<i32: 0>} : vector<128x16xi32>
    %3 = tpu.iota {dimensions = array<i32: 1>} : vector<128x16xi32>
    %c8_i32 = arith.constant 8 : i32
    %4 = vector.broadcast %c8_i32 : i32 to vector<128x16xi32>
    %5 = arith.muli %3, %4 : vector<128x16xi32>
    %6 = arith.cmpi sge, %2, %5 : vector<128x16xi32>
    %c1_i32 = arith.constant 1 : i32
    %7 = vector.broadcast %c1_i32 : i32 to vector<128x16xi32>
    %8 = arith.addi %3, %7 : vector<128x16xi32>
    %c8_i32_1 = arith.constant 8 : i32
    %9 = vector.broadcast %c8_i32_1 : i32 to vector<128x16xi32>
    %10 = arith.muli %8, %9 : vector<128x16xi32>
    %11 = arith.cmpi slt, %2, %10 : vector<128x16xi32>
    %12 = arith.andi %6, %11 : vector<128x16xi1>
    %13 = arith.extui %12 : vector<128x16xi1> to vector<128x16xi32>
    %14 = arith.sitofp %13 : vector<128x16xi32> to vector<128x16xf32>
    %15 = tpu.iota {dimensions = array<i32: 0>} : vector<16x128xi32>
    %16 = tpu.iota {dimensions = array<i32: 1>} : vector<16x128xi32>
    %c8_i32_2 = arith.constant 8 : i32
    %17 = vector.broadcast %c8_i32_2 : i32 to vector<16x128xi32>
    %18 = arith.muli %15, %17 : vector<16x128xi32>
    %19 = arith.cmpi sge, %16, %18 : vector<16x128xi32>
    %c1_i32_3 = arith.constant 1 : i32
    %20 = vector.broadcast %c1_i32_3 : i32 to vector<16x128xi32>
    %21 = arith.addi %15, %20 : vector<16x128xi32>
    %c8_i32_4 = arith.constant 8 : i32
    %22 = vector.broadcast %c8_i32_4 : i32 to vector<16x128xi32>
    %23 = arith.muli %21, %22 : vector<16x128xi32>
    %24 = arith.cmpi slt, %16, %23 : vector<16x128xi32>
    %25 = arith.andi %19, %24 : vector<16x128xi1>
    %26 = arith.extui %25 : vector<16x128xi1> to vector<16x128xi32>
    %27 = arith.sitofp %26 : vector<16x128xi32> to vector<16x128xf32>
    %cst = arith.constant dense<0.000000e+00> : vector<4x16xf32>
    %28 = tpu.matmul %1, %14, %cst {dimension_numbers = #tpu.dot_dimension_numbers<[1], [0], [0], [1], [0, 0, 1, 1], [], []>} : vector<4x128xf32>, vector<128x16xf32>, vector<4x16xf32> -> vector<4x16xf32>
    %cst_5 = arith.constant 1.250000e-01 : f32
    %29 = vector.broadcast %cst_5 : f32 to vector<4x16xf32>
    %30 = arith.mulf %28, %29 : vector<4x16xf32>
    %cst_6 = arith.constant 9.99999974E-6 : f32
    %31 = vector.broadcast %cst_6 : f32 to vector<4x16xf32>
    %32 = arith.addf %30, %31 : vector<4x16xf32>
    %33 = math.rsqrt %32 : vector<4x16xf32>
    %cst_7 = arith.constant dense<0.000000e+00> : vector<4x128xf32>
    %34 = tpu.matmul %33, %27, %cst_7 {dimension_numbers = #tpu.dot_dimension_numbers<[1], [0], [0], [1], [0, 0, 1, 1], [], []>} : vector<4x16xf32>, vector<16x128xf32>, vector<4x128xf32> -> vector<4x128xf32>
    %35 = arith.mulf %0, %34 : vector<4x128xf32>
    %c0_8 = arith.constant 0 : index
    %c0_9 = arith.constant 0 : index
    %36 = vector.load %arg2[%c0_8, %c0_9] : memref<4x128xf32, #tpu.memory_space<vmem>>, vector<4x128xf32>
    tpu.vector_store %arg2[%c0_8, %c0_9], %35 {strides = array<i32>} : memref<4x128xf32, #tpu.memory_space<vmem>>, vector<4x128xf32>,
    return
  }
  func.func @transform_0(%arg0: i32) -> (i32, i32) {
    %c0_i32 = arith.constant 0 : i32
    %c0_i32_0 = arith.constant 0 : i32
    return %arg0, %c0_i32 : i32, i32
  }
  func.func @transform_1(%arg0: i32) -> (i32, i32) {
    %c0_i32 = arith.constant 0 : i32
    %c0_i32_0 = arith.constant 0 : i32
    return %arg0, %c0_i32 : i32, i32
  }
}

</mosaic_0001>

<bundles_post_ra>
// kernel: tpu_custom_call.1
= control target key start
LH: loop header
LB: loop body
LE: loop exit
PB: predicated region body
PF: predicated region fallthrough
CT: control target
= control target key end

     0   :  { %6 = vsyncpa [#allocation3], 0  ;;  %s658_s0 = inlined_call_operand.hbm [shape: f32[4,128], index: 0, kind: input, shape index: {}]   ;;  %s659_s1 = inlined_call_operand.hbm [shape: f32[4,128], index: 1, kind: output, shape index: {}]  }
   0x1   :  { %7 = vsyncpa [#allocation4], 0  ;;  %s487_s6 = smov [#allocation2]   ;;  %s439_s10 = scalar_lea.hbm %s658_s0, 64 }
   0x2   :  { %s14_s7 = sshll.u32 %s487_s6, 4  ;;  %p440_p0 = scmp.ne.s32.totalorder %s658_s0, %s439_s10  ;;  %s15_s7 = int_to_ptr.vmem [resolvable:$true] %s14_s7 }
   0x3   :  { %p443_p1 = scmp.lt.u32.totalorder %s439_s10, %s658_s0 }
   0x5   :  { %p445_p2 = pnand %p443_p1, %p440_p0 }
   0x7   :  { %448 = shalt.err (!%p445_p2)
}
   0x8   :  { %s449_s15 = scalar_lea.vmem %s15_s7, 64  ;;  %p454_p4 = scmp.lt.s32.totalorder %s15_s7, %s15_s7 }
   0x9   :  { %p450_p3 = scmp.ne.s32.totalorder %s15_s7, %s449_s15  ;;  %p455_p5 = scmp.lt.s32.totalorder %s449_s15, %s449_s15 }
   0xb   :  { %p456_p6 = por %p455_p5, %p454_p4 }
   0xd   :  { %p457_p7 = pnand %p456_p6, %p450_p3 }
   0xf   :  { %460 = shalt.err (!%p457_p7)
}
  0x10   :  { %17 = dma.hbm_to_vmem [thread:$0]  %s658_s0, 64, %s15_s7, [#allocation3]   ;;  %v23_v0 = vlaneseq }
  0x11   :  { %483 = dma.done.wait [#allocation3], 64  }
  0x12   :  { %484 = vsyncadd [#allocation3], 4294967232  ;;  %v488_v1 = vmov 0.0|0.0   ;;  %v517_v2 = vshrl.u32 %v23_v0, 7  ;;  %v519_v3 = vand.u32 127, %v23_v0  ;;  %vm489_vm0 = vmmov 0  }
  0x13   :  { %404 = vmatprep.subr.bf16.mxu0 %v488_v1  ;;  %428 = vmatprep.subr.bf16.mxu1 %v488_v1  ;;  %v490_v4 = vmov 0.0   ;;  %v491_v14 = vmov 1.0|1.0   ;;  %v21_v31 = vld [vmem:[#allocation2] sm:$0xf]  ;;  %s492_s0 = smov [#allocation5]  }
  0x14   :  { %394 = vmatprep.mubr.msk.f32.mxu0 %vm489_vm0, %v490_v4  ;;  %401 = vmatprep.mubr.msk.f32.mxu1 %vm489_vm0, %v490_v4  ;;  %v522_v5 = vadd.s32 8, %v517_v2  ;;  %v525_v6 = vmul.u32 8, %v519_v3  ;;  %v59_v7 = vadd.s32 1, %v519_v3  ;;  %v26_v8 = vadd.s32 16, %v517_v2  ;;  %s296_s18 = sshll.u32 %s492_s0, 4  ;;  %s297_s18 = int_to_ptr.vmem [resolvable:$true] %s296_s18 }
  0x15   :  { %v27_v10 = vadd.s32 24, %v517_v2  ;;  %v28_v11 = vadd.s32 32, %v517_v2  ;;  %v29_v12 = vadd.s32 40, %v517_v2  ;;  %v30_v13 = vadd.s32 48, %v517_v2  ;;  %s461_s19 = scalar_lea.vmem %s297_s18, 64  ;;  %p466_p9 = scmp.lt.s32.totalorder %s297_s18, %s297_s18 }
  0x16   :  { %vm43_vm1 = vcmp.ge.s32.totalorder %v517_v2, %v525_v6  ;;  %v531_v9 = vmul.u32 8, %v59_v7  ;;  %vm44_vm2 = vcmp.ge.s32.totalorder %v522_v5, %v525_v6  ;;  %vm45_vm6 = vcmp.ge.s32.totalorder %v26_v8, %v525_v6  ;;  %p462_p8 = scmp.ne.s32.totalorder %s297_s18, %s461_s19  ;;  %p467_p10 = scmp.lt.s32.totalorder %s461_s19, %s461_s19 }
  0x17   :  { %vm46_vm9 = vcmp.ge.s32.totalorder %v27_v10, %v525_v6  ;;  %vm47_vm13 = vcmp.ge.s32.totalorder %v28_v11, %v525_v6  ;;  %v31_v15 = vadd.s32 56, %v517_v2  ;;  %vm48_vm0 = vcmp.ge.s32.totalorder %v29_v12, %v525_v6 }
  0x18   :  { %vm61_vm3 = vcmp.lt.s32.totalorder %v517_v2, %v531_v9  ;;  %vm62_vm4 = vcmp.lt.s32.totalorder %v522_v5, %v531_v9  ;;  %vm63_vm7 = vcmp.lt.s32.totalorder %v26_v8, %v531_v9  ;;  %vm64_vm10 = vcmp.lt.s32.totalorder %v27_v10, %v531_v9  ;;  %p468_p11 = por %p467_p10, %p466_p9 }
  0x19   :  { %vm77_vm5 = vmand %vm43_vm1, %vm61_vm3  ;;  %vm65_vm14 = vcmp.lt.s32.totalorder %v28_v11, %v531_v9  ;;  %vm66_vm1 = vcmp.lt.s32.totalorder %v29_v12, %v531_v9  ;;  %v32_v16 = vadd.s32 64, %v517_v2  ;;  %v33_v18 = vadd.s32 72, %v517_v2 }
  0x1a   :  { %vm78_vm8 = vmand %vm44_vm2, %vm62_vm4  ;;  %vm49_vm4 = vcmp.ge.s32.totalorder %v30_v13, %v525_v6  ;;  %v34_v19 = vadd.s32 80, %v517_v2  ;;  %v35_v21 = vadd.s32 88, %v517_v2  ;;  %v36_v24 = vadd.s32 96, %v517_v2  ;;  %p469_p12 = pnand %p468_p11, %p462_p8 }
  0x1b   :  { %vm405_vm11 = vmpackc.low %vm78_vm8, %vm77_vm5  ;;  %vm67_vm5 = vcmp.lt.s32.totalorder %v30_v13, %v531_v9  ;;  %vm68_vm8 = vcmp.lt.s32.totalorder %v31_v15, %v531_v9  ;;  %v37_v26 = vadd.s32 104, %v517_v2  ;;  %v38_v29 = vadd.s32 112, %v517_v2 }
  0x1c   :  { %406 = vmatpush3.bf16.msk.msra.mxu0 %vm405_vm11, %v491_v14  ;;  %vm79_vm12 = vmand %vm45_vm6, %vm63_vm7  ;;  %vm50_vm7 = vcmp.ge.s32.totalorder %v31_v15, %v525_v6  ;;  %vm51_vm11 = vcmp.ge.s32.totalorder %v32_v16, %v525_v6  ;;  %v39_v30 = vadd.s32 120, %v517_v2  ;;  %v22_v32 = vmul.f32 %v21_v31, %v21_v31 }
  0x1d   :  { %407 = vmatprep.subr.bf16.mxu0 %v488_v1  ;;  %vm80_vm15 = vmand %vm46_vm9, %vm64_vm10  ;;  %v125_v33 = vmul.u32 8, %v517_v2  ;;  %v126_v34 = vmul.u32 8, %v522_v5  ;;  %v129_v35 = vadd.s32 1, %v517_v2  ;;  %v130_v36 = vadd.s32 1, %v522_v5 }
  0x1e   :  { %vm408_vm2 = vmpackc.low %vm80_vm15, %vm79_vm12  ;;  %vm69_vm12 = vcmp.lt.s32.totalorder %v32_v16, %v531_v9  ;;  %vm70_vm15 = vcmp.lt.s32.totalorder %v33_v18, %v531_v9 }
  0x1f   :  { %vm555_vm3 = vmand %vm47_vm13, %vm65_vm14  ;;  %vm52_vm14 = vcmp.ge.s32.totalorder %v33_v18, %v525_v6  ;;  %v131_v37 = vmul.u32 8, %v129_v35  ;;  %v132_v38 = vmul.u32 8, %v130_v36 }
  0x20   :  { %409 = vmatpush3.bf16.msk.msra.mxu0 %vm408_vm2, %v491_v14  ;;  %vm82_vm6 = vmand %vm48_vm0, %vm66_vm1  ;;  %vm53_vm2 = vcmp.ge.s32.totalorder %v34_v19, %v525_v6 }
  0x21   :  { %410 = vmatprep.subr.bf16.mxu0 %v488_v1  ;;  %vm411_vm9 = vmpackc.low %vm82_vm6, %vm555_vm3  ;;  %vm71_vm3 = vcmp.lt.s32.totalorder %v34_v19, %v531_v9  ;;  %vm72_vm6 = vcmp.lt.s32.totalorder %v35_v21, %v531_v9 }
  0x22   :  { %vm569_vm10 = vmand %vm49_vm4, %vm67_vm5  ;;  %vm54_vm5 = vcmp.ge.s32.totalorder %v35_v21, %v525_v6 }
  0x23   :  { %vm576_vm13 = vmand %vm50_vm7, %vm68_vm8 }
  0x24   :  { %412 = vmatpush3.bf16.msk.msra.mxu0 %vm411_vm9, %v491_v14  ;;  %vm414_vm0 = vmpackc.low %vm576_vm13, %vm569_vm10  ;;  %vm55_vm10 = vcmp.ge.s32.totalorder %v36_v24, %v525_v6  ;;  %vm74_vm13 = vcmp.lt.s32.totalorder %v37_v26, %v531_v9 }
  0x25   :  { %413 = vmatprep.subr.bf16.mxu0 %v488_v1  ;;  %vm588_vm1 = vmand %vm51_vm11, %vm69_vm12  ;;  %vm73_vm11 = vcmp.lt.s32.totalorder %v36_v24, %v531_v9  ;;  %vm56_vm12 = vcmp.ge.s32.totalorder %v37_v26, %v525_v6 }
  0x26   :  { %vm595_vm4 = vmand %vm52_vm14, %vm70_vm15 }
  0x27   :  { %vm417_vm7 = vmpackc.low %vm595_vm4, %vm588_vm1  ;;  %vm57_vm1 = vcmp.ge.s32.totalorder %v38_v29, %v525_v6  ;;  %vm76_vm4 = vcmp.lt.s32.totalorder %v39_v30, %v531_v9 }
  0x28   :  { %415 = vmatpush3.bf16.msk.msra.mxu0 %vm414_vm0, %v491_v14  ;;  %vm607_vm8 = vmand %vm53_vm2, %vm71_vm3  ;;  %vm75_vm2 = vcmp.lt.s32.totalorder %v38_v29, %v531_v9  ;;  %vm58_vm3 = vcmp.ge.s32.totalorder %v39_v30, %v525_v6 }
  0x29   :  { %416 = vmatprep.subr.bf16.mxu0 %v488_v1  ;;  %vm612_vm9 = vmand %vm54_vm5, %vm72_vm6 }
  0x2a   :  { %vm420_vm14 = vmpackc.low %vm612_vm9, %vm607_vm8  ;;  %vm127_vm9 = vcmp.ge.s32.totalorder %v519_v3, %v125_v33 }
  0x2b   :  { %vm89_vm15 = vmand %vm55_vm10, %vm73_vm11  ;;  %vm128_vm10 = vcmp.ge.s32.totalorder %v519_v3, %v126_v34  ;;  %vm133_vm11 = vcmp.lt.s32.totalorder %v519_v3, %v131_v37 }
  0x2c   :  { %418 = vmatpush3.bf16.msk.msra.mxu0 %vm417_vm7, %v491_v14  ;;  %vm90_vm0 = vmand %vm56_vm12, %vm74_vm13  ;;  %vm134_vm12 = vcmp.lt.s32.totalorder %v519_v3, %v132_v38 }
  0x2d   :  { %419 = vmatprep.subr.bf16.mxu0 %v488_v1  ;;  %vm423_vm5 = vmpackc.low %vm90_vm0, %vm89_vm15  ;;  %vm214_vm0 = vcmask 130048  }
  0x2e   :  { %vm91_vm6 = vmand %vm57_vm1, %vm75_vm2 }
  0x2f   :  { %vm92_vm8 = vmand %vm58_vm3, %vm76_vm4 }
  0x30   :  { %421 = vmatpush3.bf16.msk.msra.mxu0 %vm420_vm14, %v491_v14  ;;  %vm426_vm7 = vmpackc.low %vm92_vm8, %vm91_vm6 }
  0x31   :  { %422 = vmatprep.subr.bf16.mxu0 %v488_v1  ;;  %vm135_vm13 = vmand %vm127_vm9, %vm133_vm11 }
  0x32   :  { %vm136_vm14 = vmand %vm128_vm10, %vm134_vm12 }
  0x33   :  { %vm429_vm15 = vmpackc.low %vm136_vm14, %vm135_vm13 }
  0x34   :  { %424 = vmatpush3.bf16.msk.msra.mxu0 %vm423_vm5, %v491_v14  ;;  %430 = vmatpush3.bf16.msk.msra.mxu1 %vm429_vm15, %v491_v14 }
  0x35   :  { %425 = vmatprep.subr.bf16.mxu0 %v488_v1 }
  0x38   :  { %427 = vmatpush3.bf16.msk.msra.mxu0 %vm426_vm7, %v491_v14 }
  0x3b   :  { %395 = vmatmul.mubr.f32.vlgmr.msra.gmra.mrb[0].mxu0 %v22_v32 }
 0x10e   :  { %v207_v39 = vpop.f32.mrb[0].mxu0 }
 0x10f   :  { %v211_v40 = vmul.f32 0.125, %v207_v39  ;;  %v396_v41 = vpop.f32.mrb[1].mxu0 }
 0x111   :  { %v212_v42 = vadd.f32 1e-05, %v211_v40 }
 0x113   :  { %437 = vrsqrt.f32 %v212_v42 }
 0x11d   :  { %v438_v43 = vpop.eup %437 }
 0x11e   :  { %402 = vmatmul.mubr.msk.f32.vlgmr.msra.gmra.mrb[0].mxu1 %vm214_vm0, %v438_v43 }
 0x1f1   :  { %v284_v44 = vpop.f32.mrb[0].mxu1 }
 0x1f2   :  { %v288_v45 = vmul.f32 %v284_v44, %v21_v31  ;;  %v403_v46 = vpop.f32.mrb[1].mxu1 }
 0x1f4   :  { %289 = vst [vmem:[#allocation5] sm:$0xf] %v288_v45 }
 0x1f5   :  { %472 = shalt.err (!%p469_p12)
}
 0x1f6   :  { %s473_s22 = scalar_lea.hbm %s659_s1, 64 }
 0x1f7   :  { %p474_p13 = scmp.ne.s32.totalorder %s659_s1, %s473_s22  ;;  %p477_p0 = scmp.lt.u32.totalorder %s473_s22, %s659_s1 }
 0x1f9   :  { %p479_p1 = pnand %p477_p0, %p474_p13 }
 0x1fb   :  { %482 = shalt.err (!%p479_p1)
}
 0x1fc   :  { %299 = dma.vmem_to_hbm [thread:$0]  %s297_s18, 64, %s659_s1, [#allocation4]  }
 0x1fd   :  { %485 = dma.done.wait [#allocation4], 64  }
 0x1fe   :  { %486 = vsyncadd [#allocation4], 4294967232 }
 0x1ff   :  { %303 = vsyncpa [#allocation3], 1 }
 0x200   :  { %304 = vsyncpa [#allocation4], 1 }

</bundles_post_ra>
